<compile_context>
chip_gen: v7x
topology: tpu7x:2x2x1
jax: 0.10.0
libtpu: 0.0.40
codegen_flags: <defaults>
</compile_context>

<pallas_src>
import math
import functools

import jax
import jax.numpy as jnp
from jax.experimental import pallas as pl
from jax.experimental.pallas import tpu as pltpu

PAST_N_DAYS = 1                 # fixed 4x3 first-layer weight implies past_n_days == 1
IN_FEATURES = PAST_N_DAYS * 4
HIDDEN = 3
OUT = 3
ACTIVATION = "sigmoid"

ROWS = 8                        # sublanes per slab
GROUPS = 2                      # two sample groups per slab (rows 0:4 and 4:8)
GROUP_ROWS = ROWS // GROUPS     # 4
LANE_ALIGN = 128
DEFAULT_MAX_TILE_L = 2048       # lane-chunk width per grid step (2 samples per lane column)

# --- compile-time weights (exactly as defined by the module / reset_parameters) ---
W1_CONST = (
    (0.0001, 0.0001, 0.0001),
    (0.001,  0.002,  0.001),
    (0.0002, 0.032,  0.002),
    (0.003,  0.0015, 0.003),
)                                                         # (4, 3) fixed weight_tensor
W2_CONST = tuple((0.001,) * OUT for _ in range(HIDDEN))   # (3, 3) constant-0.001 init

W1_ARR = jnp.array(W1_CONST, jnp.float32)
W2_ARR = jnp.array(W2_CONST, jnp.float32)


def _round_up(x, m):
    return -(-x // m) * m


def _act(r, activation, approx):
    if activation == "leaky_relu":
        return jnp.where(r >= 0, r, 0.01 * r)
    if activation == "elu":
        return jnp.where(r >= 0, r, jnp.exp(r) - 1.0)
    if activation == "sigmoid":
        # exp -> EUP, reciprocal -> EUP; approx=True drops the Newton-refinement VALU work
        return pl.reciprocal(1.0 + jnp.exp(-r), approx=approx)
    return r


def _nn2layer_kernel(bias_ref, xt_ref, o_ref, *, activation, approx):
    # bias_ref: (8,)      SMEM, [0:3] = b1, [3:6] = b2 (whole array, replicated per step)
    # xt_ref  : (8, T)    VMEM, rows 0:4 = features of group A, rows 4:8 = group B (lane = sample)
    # o_ref   : (8, T)    VMEM, rows 0:3 = outputs of group A, rows 4:7 = group B, rows 3/7 = 0
    x = xt_ref[...]                                                  # one full-tile load
    b1 = [bias_ref[j] for j in range(HIDDEN)]
    b2 = [bias_ref[HIDDEN + j] for j in range(OUT)]

    rows = []
    for g in range(GROUPS):
        base = g * GROUP_ROWS
        feats = [x[base + k:base + k + 1, :] for k in range(IN_FEATURES)]   # in-vreg row selects

        # layer 1: h_j = sum_k W1[k, j] * x_k + b1[j]   (weights are Python literals)
        hidden = []
        for j in range(HIDDEN):
            hj = b1[j]
            for k in range(IN_FEATURES):
                hj = hj + W1_CONST[k][j] * feats[k]
            hidden.append(_act(hj, activation, approx))

        # layer 2: r_j = sum_i W2[i, j] * h_i + b2[j]
        for j in range(OUT):
            rj = b2[j]
            for i in range(HIDDEN):
                rj = rj + W2_CONST[i][j] * hidden[i]
            rj = _act(rj, activation, approx)
            rj = jnp.clip(rj, 0.0, 1.0)
            if activation == "elu":
                rj = rj + 1.0
            rows.append(rj)
        rows.append(jnp.zeros_like(rows[-1]))                        # padding row 3 / row 7

    o_ref[...] = jnp.concatenate(rows, axis=0)                       # full-tile, lane-dense store


def _pallas_forward(bias_slab, xt, *, tile_l, activation, approx):
    rows, cols_total = xt.shape
    assert rows == ROWS and cols_total % tile_l == 0
    num_tiles = cols_total // tile_l
    kernel = functools.partial(_nn2layer_kernel, activation=activation, approx=approx)
    cost = pl.CostEstimate(
        flops=120 * GROUPS * cols_total,
        transcendentals=(2 * (HIDDEN + OUT) * GROUPS * cols_total
                         if activation in ("sigmoid", "elu") else 0),
        bytes_accessed=2 * ROWS * cols_total * 4 + ROWS * 4,
    )
    return pl.pallas_call(
        kernel,
        out_shape=jax.ShapeDtypeStruct((ROWS, cols_total), jnp.float32),
        grid=(num_tiles,),
        in_specs=[
            pl.BlockSpec(memory_space=pltpu.MemorySpace.SMEM),       # biases: whole (8,) in SMEM
            pl.BlockSpec((ROWS, tile_l), lambda i: (0, i)),          # streamed lane chunks (VMEM)
        ],
        out_specs=pl.BlockSpec((ROWS, tile_l), lambda i: (0, i)),
        compiler_params=pltpu.CompilerParams(
            dimension_semantics=("parallel",),                       # 2-TC split on v7x
        ),
        cost_estimate=cost,
    )(bias_slab, xt)


# ----------------------------- packing helpers -----------------------------

def pack_biases(b1, b2):
    """One-time (8,) SMEM bias slab: [0:3] = b1, [3:6] = b2."""
    slab = jnp.zeros((ROWS,), jnp.float32)
    slab = slab.at[0:HIDDEN].set(b1.astype(jnp.float32))
    slab = slab.at[HIDDEN:HIDDEN + OUT].set(b2.astype(jnp.float32))
    return slab


def pack_inputs(x_batch, cols_total):
    """(B, 4) -> (8, cols_total): group A samples in rows 0:4, group B in rows 4:8."""
    b = x_batch.shape[0]
    xpad = jnp.zeros((GROUPS * cols_total, IN_FEATURES), jnp.float32)
    xpad = xpad.at[:b].set(x_batch.astype(jnp.float32).reshape(b, IN_FEATURES))
    return (xpad.reshape(GROUPS, cols_total, IN_FEATURES)
                .transpose(0, 2, 1)
                .reshape(ROWS, cols_total))


def unpack_outputs(out, batch):
    parts = [out[g * GROUP_ROWS:g * GROUP_ROWS + OUT, :].T for g in range(GROUPS)]
    return jnp.concatenate(parts, axis=0)[:batch]


def _choose_tiling(batch, max_tile_l):
    assert max_tile_l % LANE_ALIGN == 0 and max_tile_l >= LANE_ALIGN
    cols = max(1, -(-batch // GROUPS))                    # ceil(batch / 2) lane columns needed
    tile_l = min(max_tile_l, _round_up(cols, LANE_ALIGN))
    num_tiles = -(-cols // tile_l)
    if num_tiles > 1 and num_tiles % 2:                   # even grid extent -> even v7x 2-TC split
        num_tiles += 1
    return tile_l, num_tiles


# ----------------------------- public entry points -----------------------------

@functools.partial(jax.jit, static_argnames=("tile_l", "activation", "approx"))
def nn_2layer_forward_packed(bias_slab, xt, tile_l, activation=ACTIVATION, approx=True):
    """Hot path with zero per-call packing: caller keeps data in the packed (8, cols) layout."""
    return _pallas_forward(bias_slab, xt, tile_l=tile_l, activation=activation, approx=approx)


@functools.partial(jax.jit, static_argnames=("activation", "approx", "max_tile_l"))
def nn_2layer_fixed_first_layer_batch(x_batch, b1, b2, activation=ACTIVATION,
                                      approx=True, max_tile_l=DEFAULT_MAX_TILE_L):
    """Batched forward: x_batch (B, 4) -> (B, 3). Any B (streamed over a lane-chunk grid)."""
    batch = x_batch.shape[0]
    tile_l, num_tiles = _choose_tiling(batch, max_tile_l)
    cols_total = tile_l * num_tiles
    xt = pack_inputs(x_batch, cols_total)
    bias_slab = pack_biases(b1, b2)
    out = _pallas_forward(bias_slab, xt, tile_l=tile_l, activation=activation, approx=approx)
    return unpack_outputs(out, batch)


def nn_2layer_fixed_first_layer(x, b1, b2, activation=ACTIVATION, approx=True):
    """Single-sample forward matching the PyTorch module: x (past_n_days, 4) -> (3,)."""
    features = jnp.reshape(x, (1, -1))                               # torch.flatten
    return nn_2layer_fixed_first_layer_batch(
        features, b1, b2, activation=activation, approx=approx, max_tile_l=LANE_ALIGN)[0]


# ----------------------------- reference -----------------------------

def _reference_batch(x_batch, b1, b2, activation=ACTIVATION):
    f = x_batch.reshape(x_batch.shape[0], -1).astype(jnp.float32)

    def act(r):
        if activation == "leaky_relu":
            return jnp.where(r >= 0, r, 0.01 * r)
        if activation == "elu":
            return jnp.where(r >= 0, r, jnp.exp(r) - 1.0)
        if activation == "sigmoid":
            return 1.0 / (1.0 + jnp.exp(-r))
        return r

    r = act(f @ W1_ARR + b1)
    r = act(r @ W2_ARR + b2)
    r = jnp.clip(r, 0.0, 1.0)
    if activation == "elu":
        r = r + 1.0
    return r


if __name__ == "__main__":
    key = jax.random.PRNGKey(0)
    k_x, k_xb, k_xl, k_b1, k_b2 = jax.random.split(key, 5)

    # bias init mirrors SimplifiedLinear.reset_parameters (fan_in = 3 for both layers)
    bound = 1.0 / math.sqrt(3.0)
    b1 = jax.random.uniform(k_b1, (HIDDEN,), jnp.float32, -bound, bound)
    b2 = jax.random.uniform(k_b2, (OUT,), jnp.float32, -bound, bound)

    # 1) module-exact single sample: (past_n_days, 4) -> (3,)
    x = jax.random.normal(k_x, (PAST_N_DAYS, 4), jnp.float32)
    out = jax.block_until_ready(nn_2layer_fixed_first_layer(x, b1, b2))
    ref = _reference_batch(x.reshape(1, -1), b1, b2)[0]
    assert out.shape == (OUT,)
    # approx EUP reciprocal => loosen tolerance slightly
    assert jnp.allclose(out, ref, atol=2e-3, rtol=2e-3), (out, ref)

    # strict semantics check with the exact (non-approx) reciprocal path
    out_exact = jax.block_until_ready(nn_2layer_fixed_first_layer(x, b1, b2, approx=False))
    assert jnp.allclose(out_exact, ref, atol=1e-5, rtol=1e-5), (out_exact, ref)

    # 2) odd batch: exercises the 2-group sublane packing + lane padding
    xb = jax.random.normal(k_xb, (13, IN_FEATURES), jnp.float32)
    outb = jax.block_until_ready(nn_2layer_fixed_first_layer_batch(xb, b1, b2))
    refb = _reference_batch(xb, b1, b2)
    assert outb.shape == (13, OUT)
    assert jnp.allclose(outb, refb, atol=2e-3, rtol=2e-3), (outb, refb)

    # 3) multi-tile lane-chunk grid (small tile on purpose): 1000 samples -> 500 lane
    #    columns -> 2 grid steps of 256 lanes, "parallel" across TCs on v7x
    xl = jax.random.normal(k_xl, (1000, IN_FEATURES), jnp.float32)
    outl = jax.block_until_ready(
        nn_2layer_fixed_first_layer_batch(xl, b1, b2, max_tile_l=256))
    refl = _reference_batch(xl, b1, b2)
    assert outl.shape == (1000, OUT)
    assert jnp.allclose(outl, refl, atol=2e-3, rtol=2e-3), "grid path mismatch"

    # 4) elu branch (no reciprocal; matches reference to f32 round-off)
    oute = jax.block_until_ready(
        nn_2layer_fixed_first_layer_batch(xb, b1, b2, activation="elu"))
    refe = _reference_batch(xb, b1, b2, activation="elu")
    assert jnp.allclose(oute, refe, atol=1e-5, rtol=1e-5), (oute, refe)

    print("KERNEL_OK")
</pallas_src>

<mosaic_0001>
module attributes {stable_mosaic.version = 11 : i64} {
  func.func @_nn2layer_kernel(%arg0: i32, %arg1: memref<8xf32, #tpu.memory_space<smem>>, %arg2: memref<8x128xf32, #tpu.memory_space<vmem>>, %arg3: memref<8x128xf32, #tpu.memory_space<vmem>>) attributes {dimension_semantics = [#tpu.dimension_semantics<parallel>], iteration_bounds = array<i64: 1>, scalar_prefetch = 0 : i64, scratch_operands = 0 : i64, tpu.core_type = #tpu.core_type<tc>, window_params = [{transform_indices = @transform_0, window_bounds = array<i64: 8>}, {transform_indices = @transform_1, window_bounds = array<i64: 8, 128>}, {transform_indices = @transform_2, window_bounds = array<i64: 8, 128>}]} {
    %c0 = arith.constant 0 : index
    %c0_0 = arith.constant 0 : index
    %0 = vector.load %arg2[%c0, %c0_0] : memref<8x128xf32, #tpu.memory_space<vmem>>, vector<8x128xf32>
    %c0_1 = arith.constant 0 : index
    %1 = memref.load %arg1[%c0_1] : memref<8xf32, #tpu.memory_space<smem>>
    %c1 = arith.constant 1 : index
    %2 = memref.load %arg1[%c1] : memref<8xf32, #tpu.memory_space<smem>>
    %c2 = arith.constant 2 : index
    %3 = memref.load %arg1[%c2] : memref<8xf32, #tpu.memory_space<smem>>
    %c3 = arith.constant 3 : index
    %4 = memref.load %arg1[%c3] : memref<8xf32, #tpu.memory_space<smem>>
    %c4 = arith.constant 4 : index
    %5 = memref.load %arg1[%c4] : memref<8xf32, #tpu.memory_space<smem>>
    %c5 = arith.constant 5 : index
    %6 = memref.load %arg1[%c5] : memref<8xf32, #tpu.memory_space<smem>>
    %7 = vector.extract_strided_slice %0 {offsets = [0, 0], sizes = [1, 128], strides = [1, 1]} : vector<8x128xf32> to vector<1x128xf32>
    %8 = vector.extract_strided_slice %0 {offsets = [1, 0], sizes = [1, 128], strides = [1, 1]} : vector<8x128xf32> to vector<1x128xf32>
    %9 = vector.extract_strided_slice %0 {offsets = [2, 0], sizes = [1, 128], strides = [1, 1]} : vector<8x128xf32> to vector<1x128xf32>
    %10 = vector.extract_strided_slice %0 {offsets = [3, 0], sizes = [1, 128], strides = [1, 1]} : vector<8x128xf32> to vector<1x128xf32>
    %cst = arith.constant 9.99999974E-5 : f32
    %11 = vector.broadcast %cst : f32 to vector<1x128xf32>
    %12 = arith.mulf %11, %7 : vector<1x128xf32>
    %13 = vector.broadcast %1 : f32 to vector<1x128xf32>
    %14 = arith.addf %13, %12 : vector<1x128xf32>
    %cst_2 = arith.constant 1.000000e-03 : f32
    %15 = vector.broadcast %cst_2 : f32 to vector<1x128xf32>
    %16 = arith.mulf %15, %8 : vector<1x128xf32>
    %17 = arith.addf %14, %16 : vector<1x128xf32>
    %cst_3 = arith.constant 2.000000e-04 : f32
    %18 = vector.broadcast %cst_3 : f32 to vector<1x128xf32>
    %19 = arith.mulf %18, %9 : vector<1x128xf32>
    %20 = arith.addf %17, %19 : vector<1x128xf32>
    %cst_4 = arith.constant 3.000000e-03 : f32
    %21 = vector.broadcast %cst_4 : f32 to vector<1x128xf32>
    %22 = arith.mulf %21, %10 : vector<1x128xf32>
    %23 = arith.addf %20, %22 : vector<1x128xf32>
    %cst_5 = arith.constant 0.000000e+00 : f32
    %24 = vector.broadcast %cst_5 : f32 to vector<1x128xf32>
    %25 = arith.subf %24, %23 : vector<1x128xf32>
    %26 = math.exp %25 : vector<1x128xf32>
    %cst_6 = arith.constant 1.000000e+00 : f32
    %27 = vector.broadcast %cst_6 : f32 to vector<1x128xf32>
    %28 = arith.addf %27, %26 : vector<1x128xf32>
    %29 = tpu.reciprocal %28 {approx = true} : vector<1x128xf32> -> vector<1x128xf32>
    %cst_7 = arith.constant 9.99999974E-5 : f32
    %30 = vector.broadcast %cst_7 : f32 to vector<1x128xf32>
    %31 = arith.mulf %30, %7 : vector<1x128xf32>
    %32 = vector.broadcast %2 : f32 to vector<1x128xf32>
    %33 = arith.addf %32, %31 : vector<1x128xf32>
    %cst_8 = arith.constant 2.000000e-03 : f32
    %34 = vector.broadcast %cst_8 : f32 to vector<1x128xf32>
    %35 = arith.mulf %34, %8 : vector<1x128xf32>
    %36 = arith.addf %33, %35 : vector<1x128xf32>
    %cst_9 = arith.constant 3.200000e-02 : f32
    %37 = vector.broadcast %cst_9 : f32 to vector<1x128xf32>
    %38 = arith.mulf %37, %9 : vector<1x128xf32>
    %39 = arith.addf %36, %38 : vector<1x128xf32>
    %cst_10 = arith.constant 1.500000e-03 : f32
    %40 = vector.broadcast %cst_10 : f32 to vector<1x128xf32>
    %41 = arith.mulf %40, %10 : vector<1x128xf32>
    %42 = arith.addf %39, %41 : vector<1x128xf32>
    %cst_11 = arith.constant 0.000000e+00 : f32
    %43 = vector.broadcast %cst_11 : f32 to vector<1x128xf32>
    %44 = arith.subf %43, %42 : vector<1x128xf32>
    %45 = math.exp %44 : vector<1x128xf32>
    %cst_12 = arith.constant 1.000000e+00 : f32
    %46 = vector.broadcast %cst_12 : f32 to vector<1x128xf32>
    %47 = arith.addf %46, %45 : vector<1x128xf32>
    %48 = tpu.reciprocal %47 {approx = true} : vector<1x128xf32> -> vector<1x128xf32>
    %cst_13 = arith.constant 9.99999974E-5 : f32
    %49 = vector.broadcast %cst_13 : f32 to vector<1x128xf32>
    %50 = arith.mulf %49, %7 : vector<1x128xf32>
    %51 = vector.broadcast %3 : f32 to vector<1x128xf32>
    %52 = arith.addf %51, %50 : vector<1x128xf32>
    %cst_14 = arith.constant 1.000000e-03 : f32
    %53 = vector.broadcast %cst_14 : f32 to vector<1x128xf32>
    %54 = arith.mulf %53, %8 : vector<1x128xf32>
    %55 = arith.addf %52, %54 : vector<1x128xf32>
    %cst_15 = arith.constant 2.000000e-03 : f32
    %56 = vector.broadcast %cst_15 : f32 to vector<1x128xf32>
    %57 = arith.mulf %56, %9 : vector<1x128xf32>
    %58 = arith.addf %55, %57 : vector<1x128xf32>
    %cst_16 = arith.constant 3.000000e-03 : f32
    %59 = vector.broadcast %cst_16 : f32 to vector<1x128xf32>
    %60 = arith.mulf %59, %10 : vector<1x128xf32>
    %61 = arith.addf %58, %60 : vector<1x128xf32>
    %cst_17 = arith.constant 0.000000e+00 : f32
    %62 = vector.broadcast %cst_17 : f32 to vector<1x128xf32>
    %63 = arith.subf %62, %61 : vector<1x128xf32>
    %64 = math.exp %63 : vector<1x128xf32>
    %cst_18 = arith.constant 1.000000e+00 : f32
    %65 = vector.broadcast %cst_18 : f32 to vector<1x128xf32>
    %66 = arith.addf %65, %64 : vector<1x128xf32>
    %67 = tpu.reciprocal %66 {approx = true} : vector<1x128xf32> -> vector<1x128xf32>
    %cst_19 = arith.constant 1.000000e-03 : f32
    %68 = vector.broadcast %cst_19 : f32 to vector<1x128xf32>
    %69 = arith.mulf %68, %29 : vector<1x128xf32>
    %70 = vector.broadcast %4 : f32 to vector<1x128xf32>
    %71 = arith.addf %70, %69 : vector<1x128xf32>
    %cst_20 = arith.constant 1.000000e-03 : f32
    %72 = vector.broadcast %cst_20 : f32 to vector<1x128xf32>
    %73 = arith.mulf %72, %48 : vector<1x128xf32>
    %74 = arith.addf %71, %73 : vector<1x128xf32>
    %cst_21 = arith.constant 1.000000e-03 : f32
    %75 = vector.broadcast %cst_21 : f32 to vector<1x128xf32>
    %76 = arith.mulf %75, %67 : vector<1x128xf32>
    %77 = arith.addf %74, %76 : vector<1x128xf32>
    %cst_22 = arith.constant 0.000000e+00 : f32
    %78 = vector.broadcast %cst_22 : f32 to vector<1x128xf32>
    %79 = arith.subf %78, %77 : vector<1x128xf32>
    %80 = math.exp %79 : vector<1x128xf32>
    %cst_23 = arith.constant 1.000000e+00 : f32
    %81 = vector.broadcast %cst_23 : f32 to vector<1x128xf32>
    %82 = arith.addf %81, %80 : vector<1x128xf32>
    %83 = tpu.reciprocal %82 {approx = true} : vector<1x128xf32> -> vector<1x128xf32>
    %cst_24 = arith.constant 0.000000e+00 : f32
    %cst_25 = arith.constant 1.000000e+00 : f32
    %84 = vector.broadcast %cst_24 : f32 to vector<1x128xf32>
    %85 = arith.maximumf %84, %83 : vector<1x128xf32>
    %86 = vector.broadcast %cst_25 : f32 to vector<1x128xf32>
    %87 = arith.minimumf %86, %85 : vector<1x128xf32>
    %cst_26 = arith.constant 1.000000e-03 : f32
    %88 = vector.broadcast %cst_26 : f32 to vector<1x128xf32>
    %89 = arith.mulf %88, %29 : vector<1x128xf32>
    %90 = vector.broadcast %5 : f32 to vector<1x128xf32>
    %91 = arith.addf %90, %89 : vector<1x128xf32>
    %cst_27 = arith.constant 1.000000e-03 : f32
    %92 = vector.broadcast %cst_27 : f32 to vector<1x128xf32>
    %93 = arith.mulf %92, %48 : vector<1x128xf32>
    %94 = arith.addf %91, %93 : vector<1x128xf32>
    %cst_28 = arith.constant 1.000000e-03 : f32
    %95 = vector.broadcast %cst_28 : f32 to vector<1x128xf32>
    %96 = arith.mulf %95, %67 : vector<1x128xf32>
    %97 = arith.addf %94, %96 : vector<1x128xf32>
    %cst_29 = arith.constant 0.000000e+00 : f32
    %98 = vector.broadcast %cst_29 : f32 to vector<1x128xf32>
    %99 = arith.subf %98, %97 : vector<1x128xf32>
    %100 = math.exp %99 : vector<1x128xf32>
    %cst_30 = arith.constant 1.000000e+00 : f32
    %101 = vector.broadcast %cst_30 : f32 to vector<1x128xf32>
    %102 = arith.addf %101, %100 : vector<1x128xf32>
    %103 = tpu.reciprocal %102 {approx = true} : vector<1x128xf32> -> vector<1x128xf32>
    %cst_31 = arith.constant 0.000000e+00 : f32
    %cst_32 = arith.constant 1.000000e+00 : f32
    %104 = vector.broadcast %cst_31 : f32 to vector<1x128xf32>
    %105 = arith.maximumf %104, %103 : vector<1x128xf32>
    %106 = vector.broadcast %cst_32 : f32 to vector<1x128xf32>
    %107 = arith.minimumf %106, %105 : vector<1x128xf32>
    %cst_33 = arith.constant 1.000000e-03 : f32
    %108 = vector.broadcast %cst_33 : f32 to vector<1x128xf32>
    %109 = arith.mulf %108, %29 : vector<1x128xf32>
    %110 = vector.broadcast %6 : f32 to vector<1x128xf32>
    %111 = arith.addf %110, %109 : vector<1x128xf32>
    %cst_34 = arith.constant 1.000000e-03 : f32
    %112 = vector.broadcast %cst_34 : f32 to vector<1x128xf32>
    %113 = arith.mulf %112, %48 : vector<1x128xf32>
    %114 = arith.addf %111, %113 : vector<1x128xf32>
    %cst_35 = arith.constant 1.000000e-03 : f32
    %115 = vector.broadcast %cst_35 : f32 to vector<1x128xf32>
    %116 = arith.mulf %115, %67 : vector<1x128xf32>
    %117 = arith.addf %114, %116 : vector<1x128xf32>
    %cst_36 = arith.constant 0.000000e+00 : f32
    %118 = vector.broadcast %cst_36 : f32 to vector<1x128xf32>
    %119 = arith.subf %118, %117 : vector<1x128xf32>
    %120 = math.exp %119 : vector<1x128xf32>
    %cst_37 = arith.constant 1.000000e+00 : f32
    %121 = vector.broadcast %cst_37 : f32 to vector<1x128xf32>
    %122 = arith.addf %121, %120 : vector<1x128xf32>
    %123 = tpu.reciprocal %122 {approx = true} : vector<1x128xf32> -> vector<1x128xf32>
    %cst_38 = arith.constant 0.000000e+00 : f32
    %cst_39 = arith.constant 1.000000e+00 : f32
    %124 = vector.broadcast %cst_38 : f32 to vector<1x128xf32>
    %125 = arith.maximumf %124, %123 : vector<1x128xf32>
    %126 = vector.broadcast %cst_39 : f32 to vector<1x128xf32>
    %127 = arith.minimumf %126, %125 : vector<1x128xf32>
    %cst_40 = arith.constant 0.000000e+00 : f32
    %128 = vector.broadcast %cst_40 : f32 to vector<1x128xf32>
    %129 = vector.extract_strided_slice %0 {offsets = [4, 0], sizes = [1, 128], strides = [1, 1]} : vector<8x128xf32> to vector<1x128xf32>
    %130 = vector.extract_strided_slice %0 {offsets = [5, 0], sizes = [1, 128], strides = [1, 1]} : vector<8x128xf32> to vector<1x128xf32>
    %131 = vector.extract_strided_slice %0 {offsets = [6, 0], sizes = [1, 128], strides = [1, 1]} : vector<8x128xf32> to vector<1x128xf32>
    %132 = vector.extract_strided_slice %0 {offsets = [7, 0], sizes = [1, 128], strides = [1, 1]} : vector<8x128xf32> to vector<1x128xf32>
    %cst_41 = arith.constant 9.99999974E-5 : f32
    %133 = vector.broadcast %cst_41 : f32 to vector<1x128xf32>
    %134 = arith.mulf %133, %129 : vector<1x128xf32>
    %135 = vector.broadcast %1 : f32 to vector<1x128xf32>
    %136 = arith.addf %135, %134 : vector<1x128xf32>
    %cst_42 = arith.constant 1.000000e-03 : f32
    %137 = vector.broadcast %cst_42 : f32 to vector<1x128xf32>
    %138 = arith.mulf %137, %130 : vector<1x128xf32>
    %139 = arith.addf %136, %138 : vector<1x128xf32>
    %cst_43 = arith.constant 2.000000e-04 : f32
    %140 = vector.broadcast %cst_43 : f32 to vector<1x128xf32>
    %141 = arith.mulf %140, %131 : vector<1x128xf32>
    %142 = arith.addf %139, %141 : vector<1x128xf32>
    %cst_44 = arith.constant 3.000000e-03 : f32
    %143 = vector.broadcast %cst_44 : f32 to vector<1x128xf32>
    %144 = arith.mulf %143, %132 : vector<1x128xf32>
    %145 = arith.addf %142, %144 : vector<1x128xf32>
    %cst_45 = arith.constant 0.000000e+00 : f32
    %146 = vector.broadcast %cst_45 : f32 to vector<1x128xf32>
    %147 = arith.subf %146, %145 : vector<1x128xf32>
    %148 = math.exp %147 : vector<1x128xf32>
    %cst_46 = arith.constant 1.000000e+00 : f32
    %149 = vector.broadcast %cst_46 : f32 to vector<1x128xf32>
    %150 = arith.addf %149, %148 : vector<1x128xf32>
    %151 = tpu.reciprocal %150 {approx = true} : vector<1x128xf32> -> vector<1x128xf32>
    %cst_47 = arith.constant 9.99999974E-5 : f32
    %152 = vector.broadcast %cst_47 : f32 to vector<1x128xf32>
    %153 = arith.mulf %152, %129 : vector<1x128xf32>
    %154 = vector.broadcast %2 : f32 to vector<1x128xf32>
    %155 = arith.addf %154, %153 : vector<1x128xf32>
    %cst_48 = arith.constant 2.000000e-03 : f32
    %156 = vector.broadcast %cst_48 : f32 to vector<1x128xf32>
    %157 = arith.mulf %156, %130 : vector<1x128xf32>
    %158 = arith.addf %155, %157 : vector<1x128xf32>
    %cst_49 = arith.constant 3.200000e-02 : f32
    %159 = vector.broadcast %cst_49 : f32 to vector<1x128xf32>
    %160 = arith.mulf %159, %131 : vector<1x128xf32>
    %161 = arith.addf %158, %160 : vector<1x128xf32>
    %cst_50 = arith.constant 1.500000e-03 : f32
    %162 = vector.broadcast %cst_50 : f32 to vector<1x128xf32>
    %163 = arith.mulf %162, %132 : vector<1x128xf32>
    %164 = arith.addf %161, %163 : vector<1x128xf32>
    %cst_51 = arith.constant 0.000000e+00 : f32
    %165 = vector.broadcast %cst_51 : f32 to vector<1x128xf32>
    %166 = arith.subf %165, %164 : vector<1x128xf32>
    %167 = math.exp %166 : vector<1x128xf32>
    %cst_52 = arith.constant 1.000000e+00 : f32
    %168 = vector.broadcast %cst_52 : f32 to vector<1x128xf32>
    %169 = arith.addf %168, %167 : vector<1x128xf32>
    %170 = tpu.reciprocal %169 {approx = true} : vector<1x128xf32> -> vector<1x128xf32>
    %cst_53 = arith.constant 9.99999974E-5 : f32
    %171 = vector.broadcast %cst_53 : f32 to vector<1x128xf32>
    %172 = arith.mulf %171, %129 : vector<1x128xf32>
    %173 = vector.broadcast %3 : f32 to vector<1x128xf32>
    %174 = arith.addf %173, %172 : vector<1x128xf32>
    %cst_54 = arith.constant 1.000000e-03 : f32
    %175 = vector.broadcast %cst_54 : f32 to vector<1x128xf32>
    %176 = arith.mulf %175, %130 : vector<1x128xf32>
    %177 = arith.addf %174, %176 : vector<1x128xf32>
    %cst_55 = arith.constant 2.000000e-03 : f32
    %178 = vector.broadcast %cst_55 : f32 to vector<1x128xf32>
    %179 = arith.mulf %178, %131 : vector<1x128xf32>
    %180 = arith.addf %177, %179 : vector<1x128xf32>
    %cst_56 = arith.constant 3.000000e-03 : f32
    %181 = vector.broadcast %cst_56 : f32 to vector<1x128xf32>
    %182 = arith.mulf %181, %132 : vector<1x128xf32>
    %183 = arith.addf %180, %182 : vector<1x128xf32>
    %cst_57 = arith.constant 0.000000e+00 : f32
    %184 = vector.broadcast %cst_57 : f32 to vector<1x128xf32>
    %185 = arith.subf %184, %183 : vector<1x128xf32>
    %186 = math.exp %185 : vector<1x128xf32>
    %cst_58 = arith.constant 1.000000e+00 : f32
    %187 = vector.broadcast %cst_58 : f32 to vector<1x128xf32>
    %188 = arith.addf %187, %186 : vector<1x128xf32>
    %189 = tpu.reciprocal %188 {approx = true} : vector<1x128xf32> -> vector<1x128xf32>
    %cst_59 = arith.constant 1.000000e-03 : f32
    %190 = vector.broadcast %cst_59 : f32 to vector<1x128xf32>
    %191 = arith.mulf %190, %151 : vector<1x128xf32>
    %192 = vector.broadcast %4 : f32 to vector<1x128xf32>
    %193 = arith.addf %192, %191 : vector<1x128xf32>
    %cst_60 = arith.constant 1.000000e-03 : f32
    %194 = vector.broadcast %cst_60 : f32 to vector<1x128xf32>
    %195 = arith.mulf %194, %170 : vector<1x128xf32>
    %196 = arith.addf %193, %195 : vector<1x128xf32>
    %cst_61 = arith.constant 1.000000e-03 : f32
    %197 = vector.broadcast %cst_61 : f32 to vector<1x128xf32>
    %198 = arith.mulf %197, %189 : vector<1x128xf32>
    %199 = arith.addf %196, %198 : vector<1x128xf32>
    %cst_62 = arith.constant 0.000000e+00 : f32
    %200 = vector.broadcast %cst_62 : f32 to vector<1x128xf32>
    %201 = arith.subf %200, %199 : vector<1x128xf32>
    %202 = math.exp %201 : vector<1x128xf32>
    %cst_63 = arith.constant 1.000000e+00 : f32
    %203 = vector.broadcast %cst_63 : f32 to vector<1x128xf32>
    %204 = arith.addf %203, %202 : vector<1x128xf32>
    %205 = tpu.reciprocal %204 {approx = true} : vector<1x128xf32> -> vector<1x128xf32>
    %cst_64 = arith.constant 0.000000e+00 : f32
    %cst_65 = arith.constant 1.000000e+00 : f32
    %206 = vector.broadcast %cst_64 : f32 to vector<1x128xf32>
    %207 = arith.maximumf %206, %205 : vector<1x128xf32>
    %208 = vector.broadcast %cst_65 : f32 to vector<1x128xf32>
    %209 = arith.minimumf %208, %207 : vector<1x128xf32>
    %cst_66 = arith.constant 1.000000e-03 : f32
    %210 = vector.broadcast %cst_66 : f32 to vector<1x128xf32>
    %211 = arith.mulf %210, %151 : vector<1x128xf32>
    %212 = vector.broadcast %5 : f32 to vector<1x128xf32>
    %213 = arith.addf %212, %211 : vector<1x128xf32>
    %cst_67 = arith.constant 1.000000e-03 : f32
    %214 = vector.broadcast %cst_67 : f32 to vector<1x128xf32>
    %215 = arith.mulf %214, %170 : vector<1x128xf32>
    %216 = arith.addf %213, %215 : vector<1x128xf32>
    %cst_68 = arith.constant 1.000000e-03 : f32
    %217 = vector.broadcast %cst_68 : f32 to vector<1x128xf32>
    %218 = arith.mulf %217, %189 : vector<1x128xf32>
    %219 = arith.addf %216, %218 : vector<1x128xf32>
    %cst_69 = arith.constant 0.000000e+00 : f32
    %220 = vector.broadcast %cst_69 : f32 to vector<1x128xf32>
    %221 = arith.subf %220, %219 : vector<1x128xf32>
    %222 = math.exp %221 : vector<1x128xf32>
    %cst_70 = arith.constant 1.000000e+00 : f32
    %223 = vector.broadcast %cst_70 : f32 to vector<1x128xf32>
    %224 = arith.addf %223, %222 : vector<1x128xf32>
    %225 = tpu.reciprocal %224 {approx = true} : vector<1x128xf32> -> vector<1x128xf32>
    %cst_71 = arith.constant 0.000000e+00 : f32
    %cst_72 = arith.constant 1.000000e+00 : f32
    %226 = vector.broadcast %cst_71 : f32 to vector<1x128xf32>
    %227 = arith.maximumf %226, %225 : vector<1x128xf32>
    %228 = vector.broadcast %cst_72 : f32 to vector<1x128xf32>
    %229 = arith.minimumf %228, %227 : vector<1x128xf32>
    %cst_73 = arith.constant 1.000000e-03 : f32
    %230 = vector.broadcast %cst_73 : f32 to vector<1x128xf32>
    %231 = arith.mulf %230, %151 : vector<1x128xf32>
    %232 = vector.broadcast %6 : f32 to vector<1x128xf32>
    %233 = arith.addf %232, %231 : vector<1x128xf32>
    %cst_74 = arith.constant 1.000000e-03 : f32
    %234 = vector.broadcast %cst_74 : f32 to vector<1x128xf32>
    %235 = arith.mulf %234, %170 : vector<1x128xf32>
    %236 = arith.addf %233, %235 : vector<1x128xf32>
    %cst_75 = arith.constant 1.000000e-03 : f32
    %237 = vector.broadcast %cst_75 : f32 to vector<1x128xf32>
    %238 = arith.mulf %237, %189 : vector<1x128xf32>
    %239 = arith.addf %236, %238 : vector<1x128xf32>
    %cst_76 = arith.constant 0.000000e+00 : f32
    %240 = vector.broadcast %cst_76 : f32 to vector<1x128xf32>
    %241 = arith.subf %240, %239 : vector<1x128xf32>
    %242 = math.exp %241 : vector<1x128xf32>
    %cst_77 = arith.constant 1.000000e+00 : f32
    %243 = vector.broadcast %cst_77 : f32 to vector<1x128xf32>
    %244 = arith.addf %243, %242 : vector<1x128xf32>
    %245 = tpu.reciprocal %244 {approx = true} : vector<1x128xf32> -> vector<1x128xf32>
    %cst_78 = arith.constant 0.000000e+00 : f32
    %cst_79 = arith.constant 1.000000e+00 : f32
    %246 = vector.broadcast %cst_78 : f32 to vector<1x128xf32>
    %247 = arith.maximumf %246, %245 : vector<1x128xf32>
    %248 = vector.broadcast %cst_79 : f32 to vector<1x128xf32>
    %249 = arith.minimumf %248, %247 : vector<1x128xf32>
    %cst_80 = arith.constant 0.000000e+00 : f32
    %250 = vector.broadcast %cst_80 : f32 to vector<1x128xf32>
    %251 = tpu.concatenate %87, %107, %127, %128, %209, %229, %249, %250 in 0 : vector<1x128xf32>, vector<1x128xf32>, vector<1x128xf32>, vector<1x128xf32>, vector<1x128xf32>, vector<1x128xf32>, vector<1x128xf32>, vector<1x128xf32> -> vector<8x128xf32>
    %c0_81 = arith.constant 0 : index
    %c0_82 = arith.constant 0 : index
    %252 = vector.load %arg3[%c0_81, %c0_82] : memref<8x128xf32, #tpu.memory_space<vmem>>, vector<8x128xf32>
    tpu.vector_store %arg3[%c0_81, %c0_82], %251 {strides = array<i32>} : memref<8x128xf32, #tpu.memory_space<vmem>>, vector<8x128xf32>,
    return
  }
  func.func @transform_0(%arg0: i32) -> i32 {
    %c0_i32 = arith.constant 0 : i32
    %c0_i32_0 = arith.constant 0 : i32
    return %c0_i32 : i32
  }
  func.func @transform_1(%arg0: i32) -> (i32, i32) {
    %c0_i32 = arith.constant 0 : i32
    %c0_i32_0 = arith.constant 0 : i32
    return %c0_i32, %arg0 : i32, i32
  }
  func.func @transform_2(%arg0: i32) -> (i32, i32) {
    %c0_i32 = arith.constant 0 : i32
    %c0_i32_0 = arith.constant 0 : i32
    return %c0_i32, %arg0 : i32, i32
  }
}

</mosaic_0001>

<bundles_post_ra>
// kernel: nn_2layer_fixed_first_layer_batch.1
= control target key start
LH: loop header
LB: loop body
LE: loop exit
PB: predicated region body
PF: predicated region fallthrough
CT: control target
= control target key end

     0   :  { %7 = vsyncpa [#allocation3], 0  ;;  %s219_s0 = inlined_call_operand.vmem [shape: f32[8], index: 0, kind: input, shape index: {}]   ;;  %s220_s1 = inlined_call_operand.vmem [shape: f32[8,128], index: 1, kind: input, shape index: {}]   ;;  %s221_s2 = inlined_call_operand.vmem [shape: f32[8,128], index: 2, kind: output, shape index: {}]  }
   0x1   :  { %s14_s11 = sshll.u32 %s219_s0, 4  ;;  %s15_s11 = int_to_ptr.vmem [resolvable:$true] %s14_s11 }
   0x2   :  { %s180_s12 = scalar_lea.vmem %s15_s11, 16  ;;  %p185_p1 = scmp.lt.s32.totalorder %s15_s11, %s15_s11 }
   0x3   :  { %p181_p0 = scmp.ne.s32.totalorder %s15_s11, %s180_s12  ;;  %p186_p2 = scmp.lt.s32.totalorder %s180_s12, %s180_s12 }
   0x5   :  { %p187_p3 = por %p186_p2, %p185_p1 }
   0x7   :  { %p188_p4 = pnand %p187_p3, %p181_p0 }
   0x9   :  { %191 = shalt.err (!%p188_p4)
}
   0xa   :  { %s194_s13 = smov [#allocation2]  }
   0xb   :  { %17 = dma.vmem_to_smem %s15_s11, 16, %s194_s13, [#allocation3]  }
   0xc   :  { %192 = dma.done.wait [#allocation3], 16  }
   0xd   :  { %193 = vsyncadd [#allocation3], 4294967280 }
   0xe   :  { %23 = sfence }
   0xf   :  { %v24_v0 = vld [vmem:[%s220_s1] sm:$0xff]  ;;  %s25_s16 = sld [smem:[#allocation2]]  ;;  %s150_s17 = sld [smem:[#allocation2 + $0x1]]  ;;  %vm130_vm0 = vcmask 1040384   ;;  %vm132_vm1 = vcmask 1041408   ;;  %vm134_vm2 = vcmask 1042432  }
  0x10   :  { %s151_s0 = sld [smem:[#allocation2 + $0x2]]  ;;  %v34_v1 = vmul.f32 0.001, %v24_v0  ;;  %v31_v2 = vmul.f32 0.0001, %v24_v0  ;;  %s152_s1 = sld [smem:[#allocation2 + $0x3]] }
  0x11   :  { %v39_v3 = vmul.f32 0.0002, %v24_v0  ;;  %v56_v4 = vmul.f32 0.002, %v24_v0  ;;  %v61_v5 = vmul.f32 0.032, %v24_v0 }
  0x12   :  { %v36_v6 = vrot.slane %v34_v1, 1  ;;  %v44_v7 = vmul.f32 0.003, %v24_v0  ;;  %v66_v9 = vmul.f32 0.0015, %v24_v0  ;;  %s153_s18 = sld [smem:[#allocation2 + $0x4]] }
  0x13   :  { %v58_v8 = vrot.slane %v56_v4, 1  ;;  %v41_v11 = vrot.slane %v39_v3, 2  ;;  %v63_v15 = vrot.slane %v61_v5, 2  ;;  %v79_v18 = vrot.slane %v56_v4, 2  ;;  %s154_s19 = sld [smem:[#allocation2 + $0x5]] }
  0x14   :  { %v46_v20 = vrot.slane %v44_v7, 3  ;;  %v68_v22 = vrot.slane %v66_v9, 3  ;;  %vm136_vm3 = vcmask 1043456   ;;  %vm138_vm4 = vcmask 1044480  }
  0x15   :  { %v32_v10 = vstv %s25_s16  ;;  %v54_v12 = vstv %s150_s17  ;;  %vm140_vm5 = vcmask 1045504   ;;  %vm142_vm6 = vcmask 1046528  }
  0x16   :  { %v33_v13 = vadd.f32 %v32_v10, %v31_v2  ;;  %v55_v14 = vadd.f32 %v54_v12, %v31_v2  ;;  %v76_v16 = vstv %s151_s0  ;;  %v89_v43 = vstv %s152_s1 }
  0x17   :  { %v77_v17 = vadd.f32 %v76_v16, %v31_v2 }
  0x18   :  { %v38_v19 = vadd.f32 %v36_v6, %v33_v13  ;;  %v60_v21 = vadd.f32 %v58_v8, %v55_v14  ;;  %v102_v44 = vstv %s153_s18 }
  0x19   :  { %v78_v23 = vadd.f32 %v77_v17, %v36_v6  ;;  %v113_v45 = vstv %s154_s19 }
  0x1a   :  { %v43_v24 = vadd.f32 %v41_v11, %v38_v19  ;;  %v65_v25 = vadd.f32 %v63_v15, %v60_v21 }
  0x1b   :  { %v81_v26 = vadd.f32 %v79_v18, %v78_v23 }
  0x1c   :  { %v48_v27 = vadd.f32 %v46_v20, %v43_v24  ;;  %v70_v28 = vadd.f32 %v68_v22, %v65_v25 }
  0x1d   :  { %v82_v29 = vadd.f32 %v81_v26, %v46_v20 }
  0x1e   :  { %v49_v30 = vsub.f32 0.0, %v48_v27  ;;  %v71_v31 = vsub.f32 0.0, %v70_v28 }
  0x1f   :  { %v83_v32 = vsub.f32 0.0, %v82_v29 }
  0x20   :  { %v50_v33 = vmul.f32 1.442695, %v49_v30  ;;  %v72_v34 = vmul.f32 1.442695, %v71_v31 }
  0x21   :  { %v84_v35 = vmul.f32 1.442695, %v83_v32 }
  0x22   :  { %156 = vpow2.f32 %v50_v33 }
  0x23   :  { %158 = vpow2.f32 %v72_v34 }
  0x24   :  { %160 = vpow2.f32 %v84_v35 }
  0x2c   :  { %v157_v36 = vpop.eup %156 }
  0x2d   :  { %v159_v37 = vpop.eup %158  ;;  %v52_v38 = vadd.f32 1.0, %v157_v36 }
  0x2e   :  { %v161_v39 = vpop.eup %160  ;;  %v74_v40 = vadd.f32 1.0, %v159_v37 }
  0x2f   :  { %162 = vrcp.f32 %v52_v38  ;;  %v86_v41 = vadd.f32 1.0, %v161_v39 }
  0x30   :  { %164 = vrcp.f32 %v74_v40 }
  0x31   :  { %166 = vrcp.f32 %v86_v41 }
  0x39   :  { %v163_v42 = vpop.eup %162 }
  0x3a   :  { %v165_v46 = vpop.eup %164  ;;  %v88_v47 = vmul.f32 0.001, %v163_v42 }
  0x3b   :  { %v167_v48 = vpop.eup %166  ;;  %v91_v49 = vmul.f32 0.001, %v165_v46 }
  0x3c   :  { %v90_v50 = vadd.f32 %v89_v43, %v88_v47  ;;  %v93_v51 = vmul.f32 0.001, %v167_v48  ;;  %v103_v52 = vadd.f32 %v102_v44, %v88_v47  ;;  %v114_v53 = vadd.f32 %v113_v45, %v88_v47 }
  0x3e   :  { %v92_v54 = vadd.f32 %v91_v49, %v90_v50  ;;  %v104_v55 = vadd.f32 %v103_v52, %v91_v49  ;;  %v115_v56 = vadd.f32 %v114_v53, %v91_v49 }
  0x40   :  { %v94_v57 = vadd.f32 %v93_v51, %v92_v54  ;;  %v105_v58 = vadd.f32 %v104_v55, %v93_v51  ;;  %v116_v59 = vadd.f32 %v115_v56, %v93_v51 }
  0x42   :  { %v95_v60 = vsub.f32 0.0, %v94_v57  ;;  %v106_v61 = vsub.f32 0.0, %v105_v58  ;;  %v117_v62 = vsub.f32 0.0, %v116_v59 }
  0x44   :  { %v96_v63 = vmul.f32 1.442695, %v95_v60  ;;  %v107_v0 = vmul.f32 1.442695, %v106_v61  ;;  %v118_v1 = vmul.f32 1.442695, %v117_v62 }
  0x46   :  { %168 = vpow2.f32 %v96_v63 }
  0x47   :  { %170 = vpow2.f32 %v107_v0 }
  0x48   :  { %172 = vpow2.f32 %v118_v1 }
  0x50   :  { %v169_v2 = vpop.eup %168 }
  0x51   :  { %v171_v3 = vpop.eup %170  ;;  %v98_v4 = vadd.f32 1.0, %v169_v2 }
  0x52   :  { %v173_v5 = vpop.eup %172  ;;  %v109_v6 = vadd.f32 1.0, %v171_v3 }
  0x53   :  { %174 = vrcp.f32 %v98_v4  ;;  %v120_v7 = vadd.f32 1.0, %v173_v5 }
  0x54   :  { %176 = vrcp.f32 %v109_v6 }
  0x55   :  { %178 = vrcp.f32 %v120_v7 }
  0x5d   :  { %v175_v8 = vpop.eup %174 }
  0x5e   :  { %v177_v9 = vpop.eup %176  ;;  %v100_v10 = vmax.f32 %v175_v8, 0.0 }
  0x5f   :  { %v179_v11 = vpop.eup %178  ;;  %v111_v12 = vmax.f32 %v177_v9, 0.0 }
  0x60   :  { %v122_v13 = vmax.f32 %v179_v11, 0.0  ;;  %v101_v14 = vmin.f32 %v100_v10, 1.0 }
  0x61   :  { %v112_v15 = vmin.f32 %v111_v12, 1.0 }
  0x62   :  { %v123_v16 = vmin.f32 %v122_v13, 1.0 }
  0x63   :  { %v125_v17 = vrot.slane %v112_v15, 7 }
  0x64   :  { %v128_v18 = vrot.slane %v123_v16, 6 }
  0x65   :  { %v131_v19 = vsel %vm130_vm0, %v101_v14, %v125_v17 }
  0x66   :  { %v133_v20 = vsel %vm132_vm1, %v131_v19, %v128_v18 }
  0x67   :  { %v135_v21 = vsel %vm134_vm2, %v133_v20, 0.0 }
  0x68   :  { %v137_v22 = vsel %vm136_vm3, %v135_v21, %v101_v14 }
  0x69   :  { %v139_v23 = vsel %vm138_vm4, %v137_v22, %v125_v17 }
  0x6a   :  { %v141_v24 = vsel %vm140_vm5, %v139_v23, %v128_v18 }
  0x6b   :  { %v143_v25 = vsel %vm142_vm6, %v141_v24, 0.0 }
  0x6c   :  { %144 = vst [vmem:[%s221_s2] sm:$0xff] %v143_v25 }
  0x6d   :  { %149 = vsyncpa [#allocation3], 1 }

</bundles_post_ra>
